<compile_context>
chip_gen: v6e
topology: v6e:2x2x1
jax: 0.10.0
libtpu: 0.0.40
codegen_flags: <defaults>
</compile_context>

<pallas_src>
import functools

import jax
import jax.numpy as jnp
from jax.experimental import pallas as pl
from jax.experimental.pallas import tpu as pltpu

BN_EPS = 1e-5


def _round_up(x, m):
    return ((x + m - 1) // m) * m


def _vmem_budgets():
    """Generation-specific VMEM budgets (v5e/v6e: 128 MiB, v7x: 64 MiB/TC)."""
    cap = 64 * 1024 * 1024                      # conservative (v7x-safe) fallback
    try:
        cap = int(pltpu.get_tpu_info().vmem_capacity_bytes)
    except Exception:
        pass
    vmem_limit = (cap * 3) // 4                 # headroom for Mosaic internals
    feat_budget = vmem_limit // 3               # per (double-buffered) feature block
    return int(vmem_limit), int(feat_budget)


# ----------------------------------------------------------------- kernels

def _pool_neck_kernel(feat_ref, convw_ref, bias_ref, pool_ref, neck_ref, *,
                      inv_hw, hw_axis):
    """grid = (batch_tiles,).

    feat_ref   : (Nt, C, HW) or (Nt, HW, C)   features, native dtype
    convw_ref  : (C, Ep)   BN-folded 1x1-conv weight (transposed)
    bias_ref   : (1, Ep)   BN-folded bias, f32
    pool_ref   : (Nt, C)   pooled features out (f32)
    neck_ref   : (Nt, Ep)  bottleneck features out (f32)
    """
    # Global average pool: reduce over HW with f32 accumulation (no explicit
    # full-size f32 copy of the feature block).
    pooled = jnp.sum(feat_ref[...], axis=hw_axis, dtype=jnp.float32) * inv_hw
    pool_ref[...] = pooled
    wc = convw_ref[...]                                     # (C, Ep)
    neck_ref[...] = (jnp.dot(pooled.astype(wc.dtype), wc,
                             preferred_element_type=jnp.float32)
                     + bias_ref[...])


def _cls_kernel(neck_ref, clsw_ref, logits_ref):
    """grid = (K_tiles, M_tiles)  (K outer => classifier weight streamed once).

    neck_ref   : (Mt, Ep) f32
    clsw_ref   : (Ep, Kt) classifier weight tile (transposed, bf16/f32)
    logits_ref : (Mt, Kt) f32
    """
    wk = clsw_ref[...]
    logits_ref[...] = jnp.dot(neck_ref[...].astype(wk.dtype), wk,
                              preferred_element_type=jnp.float32)


# ------------------------------------------------------- parameter preparation

def _default_tile_k(num_classes):
    kp = _round_up(num_classes, 128)
    if kp <= 2048:
        return kp          # one (or a couple of) wide tiles — negligible overhead
    return 1024            # large identity counts: big K tiles, few grid steps


def prepare_embedding_head_params(conv_w, bn_gamma, bn_beta, bn_mean, bn_var,
                                  cls_weight, *, eps=BN_EPS,
                                  weight_dtype=jnp.bfloat16, tile_k=None):
    """One-time weight prep (do at weight-load time, NOT per forward call):

      * fold inference BatchNorm into the 1x1-conv weight and a bias
      * pre-transpose weights for right-matmuls (no per-call HBM transpose)
      * pad E to a multiple of 128 (lane-dense stores) and K to a multiple of
        the chosen classifier K tile (>=1024 for big K)

    conv_w     : (E, C)  (torch Conv2d weight (E, C, 1, 1) also accepted)
    bn_*       : (E,)
    cls_weight : (K, E)
    """
    if conv_w.ndim == 4:
        conv_w = conv_w[:, :, 0, 0]
    E, C = conv_w.shape
    K = cls_weight.shape[0]

    scale = bn_gamma.astype(jnp.float32) * jax.lax.rsqrt(
        bn_var.astype(jnp.float32) + eps)                          # (E,)
    convw_folded = conv_w.astype(jnp.float32) * scale[:, None]     # (E, C)
    bias = bn_beta.astype(jnp.float32) - bn_mean.astype(jnp.float32) * scale

    Ep = _round_up(E, 128)
    if tile_k is None:
        tile_k = _default_tile_k(K)
    tile_k = max(128, _round_up(int(tile_k), 128))
    Kp = _round_up(max(K, tile_k), tile_k)

    conv_w_t = jnp.zeros((C, Ep), weight_dtype).at[:, :E].set(
        convw_folded.T.astype(weight_dtype))
    bias_p = jnp.zeros((1, Ep), jnp.float32).at[0, :E].set(bias)
    cls_w_t = jnp.zeros((Ep, Kp), weight_dtype).at[:E, :K].set(
        cls_weight.T.astype(weight_dtype))

    return {
        'conv_w_t': conv_w_t,   # (C, Ep)  BN-folded, transposed
        'bias': bias_p,         # (1, Ep)  f32
        'cls_w_t': cls_w_t,     # (Ep, Kp) transposed classifier weight
        'E': E,
        'K': K,
        'tile_k': tile_k,
    }


# ----------------------------------------------------------------- tiling

def _pick_tile_n(n, row_bytes, budget_bytes):
    """Largest batch tile (multiple of 8) whose VMEM feature block fits the
    budget; keeps >=2 tiles when possible so v7x's 2 TensorCores both work."""
    n8 = _round_up(n, 8)
    t = max(8, (budget_bytes // max(row_bytes, 1)) // 8 * 8)
    t = min(t, n8)
    if t >= n8 and n >= 16:
        t = max(8, _round_up(n8 // 2, 8))
    return int(t)


def _pick_tile_m(np_rows, max_tile=512):
    """Classifier M tile: up to 512 rows, balanced across tiles, multiple of 8."""
    if np_rows <= max_tile:
        return int(np_rows)
    nt = -(-np_rows // max_tile)
    return int(_round_up(-(-np_rows // nt), 8))


# ----------------------------------------------------------------- wrapper

def embedding_head_forward(features, params, *, scale=1.0, training=True,
                           neck_feat='before', channels_last=False,
                           targets=None, tile_n=None, tile_m=None, tile_k=None):
    """JAX wrapper reproducing EmbeddingHead.forward semantics.

    features : (N, C, H, W) (default) or (N, H, W, C) if channels_last=True.
               channels_last=True is the preferred (lane-dense) layout when the
               backbone is NHWC-native.
    params   : dict from prepare_embedding_head_params
    targets  : ignored (any_softmax.Linear returns logits unchanged).
    """
    del targets
    if channels_last:
        N, H, W, C = features.shape
        HW = H * W
        feat = features.reshape(N, HW, C)
        hw_axis = 1
        feat_block = lambda tn: (tn, HW, C)
    else:
        N, C, H, W = features.shape
        HW = H * W
        feat = features.reshape(N, C, HW)
        hw_axis = 2
        feat_block = lambda tn: (tn, C, HW)

    conv_w_t = params['conv_w_t']
    bias = params['bias']
    Ep = conv_w_t.shape[1]
    E, K = params['E'], params['K']
    inv_hw = 1.0 / float(HW)

    vmem_limit, feat_budget = _vmem_budgets()
    itemsize = jnp.dtype(feat.dtype).itemsize
    if channels_last:
        row_bytes = _round_up(HW, 8) * _round_up(C, 128) * itemsize
    else:
        row_bytes = _round_up(C, 8) * _round_up(HW, 128) * itemsize

    if tile_n is None:
        tile_n = _pick_tile_n(N, row_bytes, feat_budget)
    else:
        tile_n = max(8, (int(tile_n) // 8) * 8)
    Np = _round_up(max(N, tile_n), tile_n)
    if Np != N:
        feat = jnp.pad(feat, ((0, Np - N), (0, 0), (0, 0)))
    nb = Np // tile_n

    # ---- pass A: global avg pool + BN-folded 1x1-conv bottleneck -------------
    pool, neck = pl.pallas_call(
        functools.partial(_pool_neck_kernel, inv_hw=inv_hw, hw_axis=hw_axis),
        out_shape=(
            jax.ShapeDtypeStruct((Np, C), jnp.float32),    # pool_feat[..., 0, 0]
            jax.ShapeDtypeStruct((Np, Ep), jnp.float32),   # neck_feat[..., 0, 0]
        ),
        grid_spec=pltpu.PrefetchScalarGridSpec(
            num_scalar_prefetch=0,
            grid=(nb,),
            in_specs=[
                pl.BlockSpec(feat_block(tile_n), lambda i: (i, 0, 0)),
                pl.BlockSpec((C, Ep), lambda i: (0, 0)),
                pl.BlockSpec((1, Ep), lambda i: (0, 0)),
            ],
            out_specs=(
                pl.BlockSpec((tile_n, C), lambda i: (i, 0)),
                pl.BlockSpec((tile_n, Ep), lambda i: (i, 0)),
            ),
        ),
        compiler_params=pltpu.CompilerParams(
            dimension_semantics=("parallel",),
            vmem_limit_bytes=vmem_limit),
    )(feat, conv_w_t, bias)

    if not training:
        # Inference: only the bottleneck features are returned.
        return neck[:N, :E]

    # ---- pass B: classifier logits = neck @ W_cls^T ---------------------------
    cls_w_t = params['cls_w_t']
    Kp = cls_w_t.shape[1]
    if tile_k is None:
        tile_k = params['tile_k']
    tile_k = int(tile_k)
    assert Kp % tile_k == 0, "tile_k must divide the padded classifier width"
    kb = Kp // tile_k

    if tile_m is None:
        tile_m = _pick_tile_m(Np)
    else:
        tile_m = max(8, (int(tile_m) // 8) * 8)
    Mp = _round_up(Np, tile_m)
    neck_in = neck if Mp == Np else jnp.pad(neck, ((0, Mp - Np), (0, 0)))
    mb = Mp // tile_m

    logits = pl.pallas_call(
        _cls_kernel,
        out_shape=jax.ShapeDtypeStruct((Mp, Kp), jnp.float32),
        grid_spec=pltpu.PrefetchScalarGridSpec(
            num_scalar_prefetch=0,
            # K outer: the (Ep, Kp) classifier weight is streamed from HBM once;
            # only the tiny (Mp, Ep) neck matrix is re-read per K tile.
            grid=(kb, mb),
            in_specs=[
                pl.BlockSpec((tile_m, Ep), lambda k, m: (m, 0)),
                pl.BlockSpec((Ep, tile_k), lambda k, m: (0, k)),
            ],
            out_specs=pl.BlockSpec((tile_m, tile_k), lambda k, m: (m, k)),
        ),
        compiler_params=pltpu.CompilerParams(
            dimension_semantics=("parallel", "parallel"),
            vmem_limit_bytes=vmem_limit),
    )(neck_in, cls_w_t)

    pool = pool[:N, :]
    neck = neck[:N, :E]
    logits = logits[:N, :K]

    if neck_feat == 'before':
        feat_out = pool
    elif neck_feat == 'after':
        feat_out = neck
    else:
        raise KeyError(f'{neck_feat} is invalid for MODEL.HEADS.NECK_FEAT')

    # any_softmax.Linear: cls_outputs = logits (targets ignored), s = scale
    return {
        'cls_outputs': logits,
        'pred_class_logits': logits * scale,
        'features': feat_out,
    }


if __name__ == "__main__":
    key = jax.random.PRNGKey(0)
    # Small shapes chosen so batch tiling (2 tiles), K tiling (2 tiles) and
    # N/E/K padding are all exercised.
    N, C, H, W = 10, 32, 4, 4            # batch, feat_dim, spatial
    E, NUM_CLASSES = 16, 160             # embedding_dim, num_classes
    SCALE = 1.0

    k0, k1, k2, k3 = jax.random.split(key, 4)
    features = jax.random.normal(k0, (N, C, H, W), jnp.float32)

    # synthetic parameters (shapes from __init__)
    conv_w = 0.1 * jax.random.normal(k1, (E, C), jnp.float32)           # Conv2d(C, E, 1, bias=False)
    bn_gamma = 1.0 + 0.02 * jax.random.normal(k2, (E,), jnp.float32)    # weights_init_kaiming on BN
    bn_beta = jnp.zeros((E,), jnp.float32)                              # bias_freeze=True
    bn_mean = jnp.zeros((E,), jnp.float32)
    bn_var = jnp.ones((E,), jnp.float32)
    cls_weight = 0.01 * jax.random.normal(k3, (NUM_CLASSES, E), jnp.float32)  # normal_(std=0.01)

    # f32 weights (opt-in) + small explicit tiles so all tiling paths run
    params_f32 = prepare_embedding_head_params(
        conv_w, bn_gamma, bn_beta, bn_mean, bn_var, cls_weight,
        weight_dtype=jnp.float32, tile_k=128)

    out_train = embedding_head_forward(features, params_f32, scale=SCALE,
                                       training=True, neck_feat='before',
                                       tile_n=8)
    out_eval = embedding_head_forward(features, params_f32, scale=SCALE,
                                      training=False, tile_n=8)
    jax.block_until_ready(out_train)
    jax.block_until_ready(out_eval)

    # pure-JAX reference
    pooled_ref = features.mean(axis=(2, 3))                             # (N, C)
    y_ref = pooled_ref @ conv_w.T                                       # (N, E)
    neck_ref = (y_ref - bn_mean) / jnp.sqrt(bn_var + BN_EPS) * bn_gamma + bn_beta
    logits_ref = neck_ref @ cls_weight.T                                # (N, K)

    assert jnp.allclose(out_eval, neck_ref, atol=1e-4, rtol=1e-4)
    assert jnp.allclose(out_train['cls_outputs'], logits_ref, atol=1e-4, rtol=1e-4)
    assert jnp.allclose(out_train['pred_class_logits'], logits_ref * SCALE, atol=1e-4, rtol=1e-4)
    assert jnp.allclose(out_train['features'], pooled_ref, atol=1e-4, rtol=1e-4)

    # channels-last (NHWC-native backbone) feature layout: lane-dense pooling
    out_nhwc = embedding_head_forward(jnp.transpose(features, (0, 2, 3, 1)),
                                      params_f32, scale=SCALE, training=True,
                                      channels_last=True, tile_n=8)
    jax.block_until_ready(out_nhwc)
    assert jnp.allclose(out_nhwc['cls_outputs'], logits_ref, atol=1e-4, rtol=1e-4)
    assert jnp.allclose(out_nhwc['features'], pooled_ref, atol=1e-4, rtol=1e-4)

    # default path: bf16 weights (new default) + bf16 features, auto tiles;
    # pooling / both matmuls still accumulate in f32 inside the kernels.
    params_bf16 = prepare_embedding_head_params(
        conv_w, bn_gamma, bn_beta, bn_mean, bn_var, cls_weight)
    out_bf16 = embedding_head_forward(features.astype(jnp.bfloat16), params_bf16,
                                      scale=SCALE, training=True)
    jax.block_until_ready(out_bf16)
    assert jnp.allclose(out_bf16['cls_outputs'], logits_ref, atol=2e-2, rtol=2e-2)
    assert jnp.allclose(out_bf16['features'], pooled_ref, atol=2e-2, rtol=2e-2)

    print("KERNEL_OK")
</pallas_src>

<mosaic_0001>
module attributes {stable_mosaic.version = 11 : i64} {
  func.func @_pool_neck_kernel(%arg0: i32, %arg1: memref<8x32x16xf32, #tpu.memory_space<vmem>>, %arg2: memref<32x128xf32, #tpu.memory_space<vmem>>, %arg3: memref<1x128xf32, #tpu.memory_space<vmem>>, %arg4: memref<8x32xf32, #tpu.memory_space<vmem>>, %arg5: memref<8x128xf32, #tpu.memory_space<vmem>>) attributes {dimension_semantics = [#tpu.dimension_semantics<parallel>], iteration_bounds = array<i64: 2>, scalar_prefetch = 0 : i64, scratch_operands = 0 : i64, tpu.core_type = #tpu.core_type<tc>, window_params = [{transform_indices = @transform_0, window_bounds = array<i64: 8, 32, 16>}, {pipeline_mode = #tpu.pipeline_mode<synchronous>, transform_indices = @transform_1, window_bounds = array<i64: 32, 128>}, {pipeline_mode = #tpu.pipeline_mode<synchronous>, transform_indices = @transform_2, window_bounds = array<i64: 1, 128>}, {transform_indices = @transform_3, window_bounds = array<i64: 8, 32>}, {transform_indices = @transform_4, window_bounds = array<i64: 8, 128>}]} {
    %c0 = arith.constant 0 : index
    %c0_0 = arith.constant 0 : index
    %c0_1 = arith.constant 0 : index
    %0 = vector.load %arg1[%c0, %c0_0, %c0_1] : memref<8x32x16xf32, #tpu.memory_space<vmem>>, vector<8x32x16xf32>
    %cst = arith.constant dense<0.000000e+00> : vector<8x32xf32>
    %1 = vector.multi_reduction <add>, %0, %cst [2] : vector<8x32x16xf32> to vector<8x32xf32>
    %cst_2 = arith.constant 6.250000e-02 : f32
    %2 = vector.broadcast %cst_2 : f32 to vector<8x32xf32>
    %3 = arith.mulf %1, %2 : vector<8x32xf32>
    %c0_3 = arith.constant 0 : index
    %c0_4 = arith.constant 0 : index
    %4 = vector.load %arg4[%c0_3, %c0_4] : memref<8x32xf32, #tpu.memory_space<vmem>>, vector<8x32xf32>
    tpu.vector_store %arg4[%c0_3, %c0_4], %3 {strides = array<i32>} : memref<8x32xf32, #tpu.memory_space<vmem>>, vector<8x32xf32>,
    %c0_5 = arith.constant 0 : index
    %c0_6 = arith.constant 0 : index
    %5 = vector.load %arg2[%c0_5, %c0_6] : memref<32x128xf32, #tpu.memory_space<vmem>>, vector<32x128xf32>
    %cst_7 = arith.constant dense<0.000000e+00> : vector<8x128xf32>
    %6 = tpu.matmul %3, %5, %cst_7 {dimension_numbers = #tpu.dot_dimension_numbers<[1], [0], [0], [1], [0, 0, 1, 1], [], []>} : vector<8x32xf32>, vector<32x128xf32>, vector<8x128xf32> -> vector<8x128xf32>
    %c0_8 = arith.constant 0 : index
    %c0_9 = arith.constant 0 : index
    %7 = vector.load %arg3[%c0_8, %c0_9] : memref<1x128xf32, #tpu.memory_space<vmem>>, vector<1x128xf32>
    %8 = vector.broadcast %7 : vector<1x128xf32> to vector<8x128xf32>
    %9 = arith.addf %6, %8 : vector<8x128xf32>
    %c0_10 = arith.constant 0 : index
    %c0_11 = arith.constant 0 : index
    %10 = vector.load %arg5[%c0_10, %c0_11] : memref<8x128xf32, #tpu.memory_space<vmem>>, vector<8x128xf32>
    tpu.vector_store %arg5[%c0_10, %c0_11], %9 {strides = array<i32>} : memref<8x128xf32, #tpu.memory_space<vmem>>, vector<8x128xf32>,
    return
  }
  func.func @transform_0(%arg0: i32) -> (i32, i32, i32) {
    %c0_i32 = arith.constant 0 : i32
    %c0_i32_0 = arith.constant 0 : i32
    %c0_i32_1 = arith.constant 0 : i32
    return %arg0, %c0_i32, %c0_i32_0 : i32, i32, i32
  }
  func.func @transform_1(%arg0: i32) -> (i32, i32) {
    %c0_i32 = arith.constant 0 : i32
    %c0_i32_0 = arith.constant 0 : i32
    %c0_i32_1 = arith.constant 0 : i32
    return %c0_i32, %c0_i32_0 : i32, i32
  }
  func.func @transform_2(%arg0: i32) -> (i32, i32) {
    %c0_i32 = arith.constant 0 : i32
    %c0_i32_0 = arith.constant 0 : i32
    %c0_i32_1 = arith.constant 0 : i32
    return %c0_i32, %c0_i32_0 : i32, i32
  }
  func.func @transform_3(%arg0: i32) -> (i32, i32) {
    %c0_i32 = arith.constant 0 : i32
    %c0_i32_0 = arith.constant 0 : i32
    return %arg0, %c0_i32 : i32, i32
  }
  func.func @transform_4(%arg0: i32) -> (i32, i32) {
    %c0_i32 = arith.constant 0 : i32
    %c0_i32_0 = arith.constant 0 : i32
    return %arg0, %c0_i32 : i32, i32
  }
}

</mosaic_0001>

<bundles_post_ra>
// kernel: tpu_custom_call.1
= control target key start
LH: loop header
LB: loop body
LE: loop exit
PB: predicated region body
PF: predicated region fallthrough
CT: control target
= control target key end

     0   :  { %10 = vsyncpa [#allocation3], 0  ;;  %s1267_s0 = inlined_call_operand.vmem [shape: f32[16,32,16], index: 0, kind: input, shape index: {}]   ;;  %s1268_s1 = inlined_call_operand.vmem [shape: f32[32,128], index: 1, kind: input, shape index: {}]   ;;  %s1269_s2 = inlined_call_operand.vmem [shape: f32[1,128], index: 2, kind: input, shape index: {}]   ;;  %s1270_s3 = inlined_call_operand.hbm [shape: f32[16,32], index: 3, kind: output, shape index: {0}]   ;;  %s1271_s4 = inlined_call_operand.hbm [shape: f32[16,128], index: 4, kind: output, shape index: {1}]  }
   0x1   :  { %12 = vsyncpa [#allocation3 + $0x1], 0 }
   0x2   :  { %13 = vsyncpa [#allocation5], 0 }
   0x3   :  { %15 = vsyncpa [#allocation5 + $0x1], 0  ;;  %s990_s15 = smov 0   ;;  %s992_s16 = smov 0  }
   0x4   :  { %s994_s17 = smov 0   ;;  %s996_s18 = smov 0  }
   0x5 LB: > { %s1011_s19 = sadd.s32 4294967295, %s959_s18   ;;  %s789_s20 = sadd.s32 4294967294, %s959_s18   ;;  %s959_s18 = sphi %s996_s18, %s1277_s18   ;;  %s955_s17 = sphi %s994_s17, %s1276_s17   ;;  %s951_s16 = sphi %s992_s16, %s1275_s16   ;;  %s947_s15 = sphi %s990_s15, %s1274_s15  }
   0x6   : > { %s1015_s21 = sadd.s32 1, %s959_s18   ;;  %s96_s22 = sadd.s32 1, %s955_s17 }
   0x7   : > { %s93_s23 = ssub.s32 %s959_s18, %s1015_s21  ;;  %p106_p0 = scmp.ne.s32.totalorder %s955_s17, %s951_s16 }
   0x8   : > { %p94_p1 = scmp.eq.s32.totalorder %s93_s23, 0  ;;  %p107_p2 = scmp.eq.s32.totalorder %s1011_s19, 1 }
   0x9   : > { %p112_p3 = scmp.ne.s32.totalorder %s951_s16, %s947_s15  ;;  %p113_p4 = scmp.eq.s32.totalorder %s789_s20, 1 }
   0xa   : > { %s1026_s24 = scalar_select %p94_p1, %s955_s17, %s96_s22  }
   0xb   : > { %p1028_p5 = por %p107_p2, %p106_p0  ;;  %p1032_p6 = por %p113_p4, %p112_p3 }
   0xc   : > { %p792_p7 = scmp.ge.s32.totalorder %s959_s18, 1  ;;  %p173_p8 = scmp.lt.s32.totalorder %s959_s18, 3 }
   0xe   : > { %p174_p9 = pnand %p792_p7, %p173_p8 }
   0xf   : > { %s795_s27 = sshll.u32 (!%p174_p9), %s1011_s19, 3  ;;  %s1177_s14 = sand.u32 (!%p174_p9), 1, %s951_s16  }
  0x10   : > { %177 = sbr.rel (%p174_p9) target bundleno = 440 (0x1b8), region = 32  ;;  %p206_p10 = scmp.lt.s32.totalorder (!%p174_p9), %s795_s27, 15 }
  0x11   : > { %s793_s20 = sshll.u32 (!%p174_p9), %s1177_s14, 3  ;;  %s802_s23 = sshll.u32 (!%p174_p9), %s1011_s19, 7 }
  0x12   : > { %s197_s22 = scalar_lea.vmem (!%p174_p9), [#allocation2], %s793_s20  ;;  %s683_s30 = scalar_lea.hbm (!%p174_p9), %s1270_s3, %s802_s23 }
  0x13   : > { %s963_s7 = smov (!%p174_p9), [#allocation2]  }
  0x14   : > { %s873_s8 = sshll.u32 (!%p174_p9), %s963_s7, 4  ;;  %s874_s8 = int_to_ptr.vmem [resolvable:$false] %s873_s8 }
  0x15   : > { %s1279_s27 = smov (!%p206_p10, %s795_s27), 15  ;;  %vm244_vm0 = vcmask 130048   ;;  %vm962_vm1 = vmmov 0   ;;  %vm416_vm2 = vcmask 130112   ;;  %vm423_vm3 = vcmask 195712   ;;  %s875_s9 = scalar_lea.vmem %s874_s8, 256 }
  0x16   : > { %s806_s28 = sshll.u32 %s1279_s27, 5  ;;  %vm430_vm4 = vcmask 261312   ;;  %vm565_vm5 = vcmask 1041409   ;;  %vm567_vm6 = vcmask 1042434   ;;  %vm569_vm7 = vcmask 1043459   ;;  %s685_s27 = sshll.u32 %s197_s22, 4  ;;  %s686_s27 = int_to_ptr.vmem [resolvable:$true] %s685_s27 }
  0x17   : > { %s1042_s5 = scalar_lea.vmem %s1267_s0, %s806_s28  ;;  %vm571_vm8 = vcmask 1044484   ;;  %vm573_vm9 = vcmask 1045509   ;;  %vm575_vm10 = vcmask 1046534   ;;  %vm577_vm11 = vcmask 1047559   ;;  %s869_s6 = scalar_lea.vmem %s686_s27, 128 }
  0x18   : > { %v216_v0 = vld [vmem:[%s1042_s5 + $0x20] sm:$0xff]  ;;  %v217_v2 = vld [vmem:[%s1042_s5 + $0x28] sm:$0xff]  ;;  %v218_v8 = vld [vmem:[%s1042_s5 + $0x30] sm:$0xff]  ;;  %vm580_vm12 = vcmask 261120   ;;  %p870_p11 = scmp.ne.s32.totalorder %s686_s27, %s869_s6  ;;  %p876_p0 = scmp.lt.s32.totalorder %s686_s27, %s874_s8 }
  0x19   : > { %v212_v1 = vld [vmem:[%s1042_s5] sm:$0xff]  ;;  %v257_v3 = vsel %vm244_vm0, %v216_v0, 0.0  ;;  %v213_v5 = vld [vmem:[%s1042_s5 + $0x8] sm:$0xff]  ;;  %v260_v6 = vsel %vm244_vm0, %v217_v2, 0.0  ;;  %v214_v9 = vld [vmem:[%s1042_s5 + $0x10] sm:$0xff]  ;;  %v263_v10 = vsel %vm244_vm0, %v218_v8, 0.0  ;;  %p877_p1 = scmp.lt.s32.totalorder %s875_s9, %s869_s6 }
  0x1a   : > { %v245_v4 = vsel %vm244_vm0, %v212_v1, 0.0  ;;  %258 = vadd.xlane.f32.xlu1 %v257_v3  ;;  %v248_v7 = vsel %vm244_vm0, %v213_v5, 0.0  ;;  %v251_v11 = vsel %vm244_vm0, %v214_v9, 0.0  ;;  %v221_v12 = vld [vmem:[%s1042_s5 + $0x48] sm:$0xff]  ;;  %v220_v13 = vld [vmem:[%s1042_s5 + $0x40] sm:$0xff]  ;;  %v219_v16 = vld [vmem:[%s1042_s5 + $0x38] sm:$0xff]  ;;  %p871_p12 = pnand %p870_p11, %p1028_p5 }
  0x1b   : > { %246 = vadd.xlane.f32.xlu0 %v245_v4  ;;  %v272_v14 = vsel %vm244_vm0, %v221_v12, 0.0  ;;  %v269_v15 = vsel %vm244_vm0, %v220_v13, 0.0  ;;  %v215_v17 = vld [vmem:[%s1042_s5 + $0x18] sm:$0xff]  ;;  %v266_v18 = vsel %vm244_vm0, %v219_v16, 0.0  ;;  %v224_v20 = vld [vmem:[%s1042_s5 + $0x60] sm:$0xff]  ;;  %v222_v21 = vld [vmem:[%s1042_s5 + $0x50] sm:$0xff]  ;;  %p878_p2 = por %p877_p1, %p876_p0 }
  0x1c   : > { %v254_v19 = vsel %vm244_vm0, %v215_v17, 0.0  ;;  %v281_v22 = vsel %vm244_vm0, %v224_v20, 0.0  ;;  %v275_v23 = vsel %vm244_vm0, %v222_v21, 0.0  ;;  %v223_v24 = vld [vmem:[%s1042_s5 + $0x58] sm:$0xff]  ;;  %v225_v25 = vld [vmem:[%s1042_s5 + $0x68] sm:$0xff]  ;;  %v228_v28 = vld [vmem:[%s1042_s5 + $0x80] sm:$0xff]  ;;  %p872_p13 = pneg %p871_p12 }
  0x1d   : > { %v278_v26 = vsel %vm244_vm0, %v223_v24, 0.0  ;;  %v284_v27 = vsel %vm244_vm0, %v225_v25, 0.0  ;;  %v226_v29 = vld [vmem:[%s1042_s5 + $0x70] sm:$0xff]  ;;  %v293_v30 = vsel %vm244_vm0, %v228_v28, 0.0  ;;  %v227_v32 = vld [vmem:[%s1042_s5 + $0x78] sm:$0xff]  ;;  %v229_v33 = vld [vmem:[%s1042_s5 + $0x88] sm:$0xff] }
  0x1e   : > { %261 = vadd.xlane.f32.xlu1 %v260_v6  ;;  %v287_v31 = vsel %vm244_vm0, %v226_v29, 0.0  ;;  %v290_v34 = vsel %vm244_vm0, %v227_v32, 0.0  ;;  %v296_v35 = vsel %vm244_vm0, %v229_v33, 0.0  ;;  %v232_v36 = vld [vmem:[%s1042_s5 + $0xa0] sm:$0xff]  ;;  %v230_v37 = vld [vmem:[%s1042_s5 + $0x90] sm:$0xff]  ;;  %v231_v40 = vld [vmem:[%s1042_s5 + $0x98] sm:$0xff]  ;;  %p879_p3 = pnand %p878_p2, %p872_p13 }
  0x1f   : > { %249 = vadd.xlane.f32.xlu0 %v248_v7  ;;  %v305_v38 = vsel %vm244_vm0, %v232_v36, 0.0  ;;  %v299_v39 = vsel %vm244_vm0, %v230_v37, 0.0  ;;  %v233_v41 = vld [vmem:[%s1042_s5 + $0xa8] sm:$0xff]  ;;  %v302_v42 = vsel %vm244_vm0, %v231_v40, 0.0  ;;  %v236_v44 = vld [vmem:[%s1042_s5 + $0xc0] sm:$0xff]  ;;  %v234_v45 = vld [vmem:[%s1042_s5 + $0xb0] sm:$0xff] }
  0x20   : > { %v308_v43 = vsel %vm244_vm0, %v233_v41, 0.0  ;;  %v317_v46 = vsel %vm244_vm0, %v236_v44, 0.0  ;;  %v311_v47 = vsel %vm244_vm0, %v234_v45, 0.0  ;;  %v235_v48 = vld [vmem:[%s1042_s5 + $0xb8] sm:$0xff]  ;;  %v237_v49 = vld [vmem:[%s1042_s5 + $0xc8] sm:$0xff]  ;;  %v240_v52 = vld [vmem:[%s1042_s5 + $0xe0] sm:$0xff] }
  0x21   : > { %v314_v50 = vsel %vm244_vm0, %v235_v48, 0.0  ;;  %v320_v51 = vsel %vm244_vm0, %v237_v49, 0.0  ;;  %v238_v53 = vld [vmem:[%s1042_s5 + $0xd0] sm:$0xff]  ;;  %v329_v54 = vsel %vm244_vm0, %v240_v52, 0.0  ;;  %v239_v56 = vld [vmem:[%s1042_s5 + $0xd8] sm:$0xff]  ;;  %v241_v57 = vld [vmem:[%s1042_s5 + $0xe8] sm:$0xff] }
  0x22   : > { %264 = vadd.xlane.f32.xlu1 %v263_v10  ;;  %v323_v55 = vsel %vm244_vm0, %v238_v53, 0.0  ;;  %v326_v58 = vsel %vm244_vm0, %v239_v56, 0.0  ;;  %v332_v59 = vsel %vm244_vm0, %v241_v57, 0.0  ;;  %v242_v60 = vld [vmem:[%s1042_s5 + $0xf0] sm:$0xff]  ;;  %v243_v61 = vld [vmem:[%s1042_s5 + $0xf8] sm:$0xff]  ;;  %v961_v0 = vmov 0.0  }
  0x23   : > { %252 = vadd.xlane.f32.xlu0 %v251_v11  ;;  %v335_v62 = vsel %vm244_vm0, %v242_v60, 0.0  ;;  %v338_v63 = vsel %vm244_vm0, %v243_v61, 0.0  ;;  %812 = vmatprep.subr.mxu0 %v961_v0  ;;  %v585_v1 = vld [vmem:[%s1268_s1 + $0x18] sm:$0xff]  ;;  %v584_v2 = vld [vmem:[%s1268_s1 + $0x10] sm:$0xff]  ;;  %v583_v3 = vld [vmem:[%s1268_s1 + $0x8] sm:$0xff]  ;;  %s667_s5 = scalar_lea.sflag [#allocation3], %s1177_s14 }
  0x24   : > { %813 = vmatpush3.msra.mxu0 %v585_v1  ;;  %v582_v4 = vld [vmem:[%s1268_s1] sm:$0xff]  ;;  %820 = vmatprep.mubr.msk.f32.mxu0 %vm962_vm1, %v961_v0 }
  0x25   : > { %814 = vmatprep.subr.mxu0 %v961_v0 }
  0x26   : > { %273 = vadd.xlane.f32.xlu1 %v272_v14  ;;  %815 = vmatpush3.msra.mxu0 %v584_v2 }
  0x27   : > { %270 = vadd.xlane.f32.xlu0 %v269_v15  ;;  %816 = vmatprep.subr.mxu0 %v961_v0 }
  0x28   : > { %817 = vmatpush3.msra.mxu0 %v583_v3 }
  0x29   : > { %818 = vmatprep.subr.mxu0 %v961_v0 }
  0x2a   : > { %267 = vadd.xlane.f32.xlu1 %v266_v18  ;;  %819 = vmatpush3.msra.mxu0 %v582_v4 }
  0x2b   : > { %255 = vadd.xlane.f32.xlu0 %v254_v19  ;;  %v405_v19 = vlaneseq }
  0x2e   : > { %282 = vadd.xlane.f32.xlu1 %v281_v22  ;;  %v406_v22 = vand.u32 127, %v405_v19 }
  0x2f   : > { %276 = vadd.xlane.f32.xlu0 %v275_v23  ;;  %v408_v23 = vshrl.u32 %v405_v19, 7 }
  0x30   : > { %v425_v28 = vadd.s32 4294967272, %v406_v22 }
  0x31   : > { %v1122_v29 = vsub.s32 %v406_v22, %v408_v23 }
  0x32   : > { %279 = vadd.xlane.f32.xlu1 %v278_v26  ;;  %v411_v26 = vadd.s32 4294967288, %v406_v22  ;;  %v1130_v40 = vsub.s32 %v425_v28, %v408_v23 }
  0x33   : > { %285 = vadd.xlane.f32.xlu0 %v284_v27  ;;  %v418_v27 = vadd.s32 4294967280, %v406_v22 }
  0x34   : > { %v1126_v33 = vsub.s32 %v411_v26, %v408_v23 }
  0x35   : > { %v1128_v36 = vsub.s32 %v418_v27, %v408_v23 }
  0x36   : > { %294 = vadd.xlane.f32.xlu1 %v293_v30 }
  0x37   : > { %288 = vadd.xlane.f32.xlu0 %v287_v31 }
  0x3a   : > { %291 = vadd.xlane.f32.xlu1 %v290_v34 }
  0x3b   : > { %297 = vadd.xlane.f32.xlu0 %v296_v35 }
  0x3e   : > { %306 = vadd.xlane.f32.xlu1 %v305_v38 }
  0x3f   : > { %300 = vadd.xlane.f32.xlu0 %v299_v39 }
  0x42   : > { %303 = vadd.xlane.f32.xlu1 %v302_v42 }
  0x43   : > { %309 = vadd.xlane.f32.xlu0 %v308_v43 }
  0x46   : > { %318 = vadd.xlane.f32.xlu1 %v317_v46 }
  0x47   : > { %312 = vadd.xlane.f32.xlu0 %v311_v47 }
  0x4a   : > { %315 = vadd.xlane.f32.xlu1 %v314_v50 }
  0x4b   : > { %321 = vadd.xlane.f32.xlu0 %v320_v51 }
  0x4e   : > { %330 = vadd.xlane.f32.xlu1 %v329_v54 }
  0x4f   : > { %324 = vadd.xlane.f32.xlu0 %v323_v55 }
  0x52   : > { %327 = vadd.xlane.f32.xlu1 %v326_v58 }
  0x53   : > { %333 = vadd.xlane.f32.xlu0 %v332_v59 }
  0x56   : > { %339 = vadd.xlane.f32.xlu1 %v338_v63 }
  0x57   : > { %336 = vadd.xlane.f32.xlu0 %v335_v62 }
  0xa3   : > { %v259_v5 = vpop.xlane.xlu1 %258 }
  0xa4   : > { %v247_v6 = vpop.xlane.xlu0 %246  ;;  %v345_v32 = vmul.f32 0.0625, %v259_v5 }
  0xa5   : > { %v341_v39 = vmul.f32 0.0625, %v247_v6 }
  0xa6   : > { %v435_v45 = vrot.slane %v345_v32, %v1122_v29 }
  0xa7   : > { %v262_v7 = vpop.xlane.xlu1 %261  ;;  %v410_v52 = vrot.slane %v341_v39, %v1122_v29 }
  0xa8   : > { %v250_v8 = vpop.xlane.xlu0 %249  ;;  %v346_v34 = vmul.f32 0.0625, %v262_v7 }
  0xa9   : > { %v342_v35 = vmul.f32 0.0625, %v250_v8 }
  0xaa   : > { %v439_v46 = vrot.slane %v346_v34, %v1126_v33 }
  0xab   : > { %v265_v9 = vpop.xlane.xlu1 %264  ;;  %v415_v47 = vrot.slane %v342_v35, %v1126_v33 }
  0xac   : > { %v253_v10 = vpop.xlane.xlu0 %252  ;;  %v347_v37 = vmul.f32 0.0625, %v265_v9  ;;  %v440_v58 = vsel %vm416_vm2, %v439_v46, %v435_v45 }
  0xad   : > { %v343_v38 = vmul.f32 0.0625, %v253_v10  ;;  %v417_v59 = vsel %vm416_vm2, %v415_v47, %v410_v52 }
  0xae   : > { %v444_v48 = vrot.slane %v347_v37, %v1128_v36 }
  0xaf   : > { %v274_v11 = vpop.xlane.xlu1 %273  ;;  %v422_v49 = vrot.slane %v343_v38, %v1128_v36 }
  0xb0   : > { %v271_v12 = vpop.xlane.xlu0 %270  ;;  %v350_v50 = vmul.f32 0.0625, %v274_v11  ;;  %v445_v61 = vsel %vm423_vm3, %v444_v48, %v440_v58 }
  0xb1   : > { %v349_v51 = vmul.f32 0.0625, %v271_v12  ;;  %v424_v62 = vsel %vm423_vm3, %v422_v49, %v417_v59 }
  0xb2   : > { %v458_v63 = vrot.slane %v350_v50, %v1126_v33 }
  0xb3   : > { %v268_v13 = vpop.xlane.xlu1 %267  ;;  %v454_v0 = vrot.slane %v349_v51, %v1122_v29 }
  0xb4   : > { %v256_v14 = vpop.xlane.xlu0 %255  ;;  %v348_v41 = vmul.f32 0.0625, %v268_v13 }
  0xb5   : > { %v344_v42 = vmul.f32 0.0625, %v256_v14  ;;  %v459_v10 = vsel %vm416_vm2, %v458_v63, %v454_v0 }
  0xb6   : > { %v449_v53 = vrot.slane %v348_v41, %v1130_v40 }
  0xb7   : > { %v283_v15 = vpop.xlane.xlu1 %282  ;;  %v429_v54 = vrot.slane %v344_v42, %v1130_v40 }
  0xb8   : > { %v277_v16 = vpop.xlane.xlu0 %276  ;;  %v450_v1 = vsel %vm430_vm4, %v449_v53, %v445_v61  ;;  %v353_v8 = vmul.f32 0.0625, %v283_v15 }
  0xb9   : > { %v351_v55 = vmul.f32 0.0625, %v277_v16  ;;  %v431_v2 = vsel %vm430_vm4, %v429_v54, %v424_v62 }
  0xba   : > { %v566_v11 = vsel %vm565_vm5, %v450_v1, %v431_v2  ;;  %v473_v26 = vrot.slane %v353_v8, %v1122_v29 }
  0xbb   : > { %v280_v17 = vpop.xlane.xlu1 %279  ;;  %v463_v3 = vrot.slane %v351_v55, %v1128_v36 }
  0xbc   : > { %v286_v18 = vpop.xlane.xlu0 %285  ;;  %v352_v60 = vmul.f32 0.0625, %v280_v17 }
  0xbd   : > { %v354_v4 = vmul.f32 0.0625, %v286_v18  ;;  %v464_v13 = vsel %vm423_vm3, %v463_v3, %v459_v10 }
  0xbe   : > { %v468_v9 = vrot.slane %v352_v60, %v1130_v40 }
  0xbf   : > { %v295_v20 = vpop.xlane.xlu1 %294  ;;  %v477_v14 = vrot.slane %v354_v4, %v1126_v33 }
  0xc0   : > { %v1120_v21 = vpop.xlane.xlu0 %288  ;;  %v357_v12 = vmul.f32 0.0625, %v295_v20  ;;  %v469_v20 = vsel %vm430_vm4, %v468_v9, %v464_v13 }
  0xc1   : > { %v355_v16 = vmul.f32 0.0625, %v1120_v21  ;;  %v568_v3 = vsel %vm567_vm6, %v469_v20, %v566_v11 }
  0xc2   : > { %v492_v32 = vrot.slane %v357_v12, %v1122_v29 }
  0xc3   : > { %v292_v24 = vpop.xlane.xlu1 %291  ;;  %v482_v35 = vrot.slane %v355_v16, %v1128_v36 }
  0xc4   : > { %v298_v25 = vpop.xlane.xlu0 %297  ;;  %v356_v18 = vmul.f32 0.0625, %v292_v24  ;;  %v478_v24 = vsel %vm416_vm2, %v477_v14, %v473_v26 }
  0xc5   : > { %v358_v5 = vmul.f32 0.0625, %v298_v25  ;;  %v483_v53 = vsel %vm423_vm3, %v482_v35, %v478_v24 }
  0xc6   : > { %v487_v39 = vrot.slane %v356_v18, %v1130_v40 }
  0xc7   : > { %v1124_v30 = vpop.xlane.xlu1 %306  ;;  %v496_v19 = vrot.slane %v358_v5, %v1126_v33 }
  0xc8   : > { %v301_v31 = vpop.xlane.xlu0 %300  ;;  %v361_v21 = vmul.f32 0.0625, %v1124_v30 }
  0xc9   : > { %v359_v17 = vmul.f32 0.0625, %v301_v31  ;;  %v497_v41 = vsel %vm416_vm2, %v496_v19, %v492_v32 }
  0xca   : > { %v511_v49 = vrot.slane %v361_v21, %v1122_v29 }
  0xcb   : > { %v304_v43 = vpop.xlane.xlu1 %303  ;;  %v501_v37 = vrot.slane %v359_v17, %v1128_v36 }
  0xcc   : > { %v310_v44 = vpop.xlane.xlu0 %309  ;;  %v360_v15 = vmul.f32 0.0625, %v304_v43 }
  0xcd   : > { %v362_v22 = vmul.f32 0.0625, %v310_v44  ;;  %v502_v54 = vsel %vm423_vm3, %v501_v37, %v497_v41 }
  0xce   : > { %v506_v42 = vrot.slane %v360_v15, %v1130_v40 }
  0xcf   : > { %v319_v56 = vpop.xlane.xlu1 %318  ;;  %v515_v30 = vrot.slane %v362_v22, %v1126_v33 }
  0xd0   : > { %v313_v57 = vpop.xlane.xlu0 %312  ;;  %v365_v38 = vmul.f32 0.0625, %v319_v56  ;;  %v507_v58 = vsel %vm430_vm4, %v506_v42, %v502_v54 }
  0xd1   : > { %v363_v27 = vmul.f32 0.0625, %v313_v57  ;;  %v488_v57 = vsel %vm430_vm4, %v487_v39, %v483_v53  ;;  %v516_v59 = vsel %vm416_vm2, %v515_v30, %v511_v49 }
  0xd2   : > { %v530_v55 = vrot.slane %v365_v38, %v1122_v29 }
  0xd3   : > { %v316_v6 = vpop.xlane.xlu1 %315  ;;  %v520_v45 = vrot.slane %v363_v27, %v1128_v36 }
  0xd4   : > { %v322_v7 = vpop.xlane.xlu0 %321  ;;  %v364_v31 = vmul.f32 0.0625, %v316_v6 }
  0xd5   : > { %v366_v28 = vmul.f32 0.0625, %v322_v7  ;;  %v521_v63 = vsel %vm423_vm3, %v520_v45, %v516_v59 }
  0xd6   : > { %v525_v50 = vrot.slane %v364_v31, %v1130_v40 }
  0xd7   : > { %v331_v23 = vpop.xlane.xlu1 %330  ;;  %v534_v46 = vrot.slane %v366_v28, %v1126_v33 }
  0xd8   : > { %v325_v25 = vpop.xlane.xlu0 %324  ;;  %v369_v51 = vmul.f32 0.0625, %v331_v23  ;;  %v526_v4 = vsel %vm430_vm4, %v525_v50, %v521_v63 }
  0xd9   : > { %v367_v34 = vmul.f32 0.0625, %v325_v25  ;;  %v535_v0 = vsel %vm416_vm2, %v534_v46, %v530_v55 }
  0xda   : > { %v549_v5 = vrot.slane %v369_v51, %v1122_v29 }
  0xdb   : > { %v328_v43 = vpop.xlane.xlu1 %327  ;;  %v539_v52 = vrot.slane %v367_v34, %v1128_v36 }
  0xdc   : > { %v334_v44 = vpop.xlane.xlu0 %333  ;;  %v368_v47 = vmul.f32 0.0625, %v328_v43 }
  0xdd   : > { %v370_v48 = vmul.f32 0.0625, %v334_v44  ;;  %v540_v6 = vsel %vm423_vm3, %v539_v52, %v535_v0 }
  0xde   : > { %v544_v56 = vrot.slane %v368_v47, %v1130_v40 }
  0xdf   : > { %v553_v60 = vrot.slane %v370_v48, %v1126_v33  ;;  %v340_v62 = vpop.xlane.xlu1 %339  ;;  %v570_v33 = vsel %vm569_vm7, %v488_v57, %v568_v3 }
  0xe0   : > { %v337_v61 = vpop.xlane.xlu0 %336  ;;  %v372_v2 = vmul.f32 0.0625, %v340_v62  ;;  %v545_v7 = vsel %vm430_vm4, %v544_v56, %v540_v6  ;;  %v572_v10 = vsel %vm571_vm8, %v507_v58, %v570_v33 }
  0xe1   : > { %v371_v1 = vmul.f32 0.0625, %v337_v61  ;;  %v554_v11 = vsel %vm416_vm2, %v553_v60, %v549_v5  ;;  %v574_v12 = vsel %vm573_vm9, %v526_v4, %v572_v10 }
  0xe2   : > { %v563_v9 = vrot.slane %v372_v2, %v1130_v40  ;;  %v576_v14 = vsel %vm575_vm10, %v545_v7, %v574_v12 }
  0xe3   : > { %v558_v8 = vrot.slane %v371_v1, %v1128_v36 }
  0xe5   : > { %v559_v29 = vsel %vm423_vm3, %v558_v8, %v554_v11 }
  0xe6   : > { %v564_v13 = vsel %vm430_vm4, %v563_v9, %v559_v29 }
  0xe7   : > { %v578_v36 = vsel %vm577_vm11, %v564_v13, %v576_v14 }
  0xe8   : > { %821 = vmatmul.mubr.msk.f32.vlgmr.msra.gmra.mxu0 %vm580_vm12, %v578_v36  ;;  %581 = vst.msk [vmem:[%s197_s22] sm:$0xff] %vm580_vm12, %v578_v36 }
  0xe9   : > { %882 = shalt.err (!%p879_p3)
}
  0xea   : > { %s883_s10 = scalar_lea.hbm %s683_s30, 128  ;;  %s887_s13 = scalar_lea.hbm %s1270_s3, 256 }
  0xeb   : > { %p884_p4 = scmp.ne.s32.totalorder %s683_s30, %s883_s10  ;;  %p888_p9 = scmp.lt.s32.totalorder %s683_s30, %s1270_s3 }
  0xec   : > { %p889_p10 = scmp.lt.s32.totalorder %s887_s13, %s883_s10 }
  0xed   : > { %p885_p7 = pnand %p884_p4, %p1028_p5 }
  0xee   : > { %p890_p11 = por %p889_p10, %p888_p9 }
  0xef   : > { %p886_p8 = pneg %p885_p7 }
  0xf1   : > { %p891_p12 = pnand %p890_p11, %p886_p8 }
  0xf3   : > { %894 = shalt.err (!%p891_p12)
}
  0xf4   : > { %823 = dma.vmem_to_hbm [thread:$0]  (%p1028_p5), %s686_s27, 128, %s683_s30, %s667_s5   ;;  %v798_v40 = vld [vmem:[%s1269_s2] ss:$0 sm:$0xff] }
  0xf5   : > { %s204_s7 = scalar_lea.vmem [#allocation4], %s793_s20  ;;  %s1231_s11 = scalar_lea.hbm %s1271_s4, %s802_s23 }
  0xf6   : > { %s698_s8 = sshll.u32 %s204_s7, 4  ;;  %s672_s12 = scalar_lea.sflag [#allocation5], %s1177_s14  ;;  %s699_s8 = int_to_ptr.vmem [resolvable:$true] %s698_s8 }
  0xf7   : > { %s895_s27 = scalar_lea.vmem %s699_s8, 128  ;;  %s964_s30 = smov [#allocation4]  }
  0xf8   : > { %p896_p13 = scmp.ne.s32.totalorder %s699_s8, %s895_s27  ;;  %s899_s20 = sshll.u32 %s964_s30, 4  ;;  %s900_s20 = int_to_ptr.vmem [resolvable:$false] %s899_s20 }
  0xf9   : > { %s901_s5 = scalar_lea.vmem %s900_s20, 256  ;;  %p902_p2 = scmp.lt.s32.totalorder %s699_s8, %s900_s20 }
  0xfa   : > { %p897_p0 = pnand %p896_p13, %p1028_p5  ;;  %p903_p3 = scmp.lt.s32.totalorder %s901_s5, %s895_s27 }
  0xfc   : > { %p898_p1 = pneg %p897_p0  ;;  %p904_p4 = por %p903_p3, %p902_p2 }
  0xfe   : > { %p905_p7 = pnand %p904_p4, %p898_p1 }
 0x1a8   : > { %v661_v16 = vpop.f32.mrf.mxu0 }
 0x1a9   : > { %v662_v17 = vadd.f32 %v798_v40, %v661_v16 }
 0x1aa   : > { %v822_v18 = vpop.f32.mrf.mxu0 }
 0x1ab   : > { %665 = vst [vmem:[%s204_s7] sm:$0xff] %v662_v17 }
 0x1ac   : > { %908 = shalt.err (!%p905_p7)
}
 0x1ad   : > { %s909_s19 = scalar_lea.hbm %s1231_s11, 128  ;;  %s913_s13 = scalar_lea.hbm %s1271_s4, 256 }
 0x1ae   : > { %p910_p8 = scmp.ne.s32.totalorder %s1231_s11, %s909_s19  ;;  %p914_p11 = scmp.lt.s32.totalorder %s1231_s11, %s1271_s4 }
 0x1af   : > { %p915_p12 = scmp.lt.s32.totalorder %s913_s13, %s909_s19 }
 0x1b0   : > { %p911_p9 = pnand %p910_p8, %p1028_p5 }
 0x1b1   : > { %p916_p13 = por %p915_p12, %p914_p11 }
 0x1b2   : > { %p912_p10 = pneg %p911_p9 }
 0x1b4   : > { %p917_p0 = pnand %p916_p13, %p912_p10 }
 0x1b6   : > { %920 = shalt.err (!%p917_p0)
}
 0x1b7   : > { %824 = dma.vmem_to_hbm [thread:$0]  (%p1028_p5), %s699_s8, 128, %s1231_s11, %s672_s12  }
 0x1b8 PF: > { %p834_p1 = scmp.ge.s32.totalorder %s959_s18, 2  ;;  %s710_s29 = sand.u32 1, %s947_s15  }
 0x1b9   : > { %s711_s6 = scalar_lea.sflag [#allocation3], %s710_s29 }
 0x1ba   : > { %p828_p2 = pnand %p834_p1, %p1032_p6 }
 0x1bc   : > { %p829_p3 = pneg %p828_p2 }
 0x1be   : > { %938 = dma.done.wait (%p829_p3), %s711_s6, 128  }
 0x1bf   : > { %940 = vsyncadd (%p829_p3), %s711_s6, 4294967168  ;;  %s720_s7 = scalar_lea.sflag [#allocation5], %s710_s29 }
 0x1c0   : > { %942 = dma.done.wait (%p829_p3), %s720_s7, 128  }
 0x1c1   : > { %944 = vsyncadd (%p829_p3), %s720_s7, 4294967168  ;;  %p18_p5 = scmp.ge.s32.totalorder %s1015_s21, 4   ;;  %s1274_s15 = smov %s951_s16 }
 0x1c2   : > { %s1275_s16 = smov %s955_s17  ;;  %s1276_s17 = smov %s1026_s24 }
 0x1c3   : > { %s1277_s18 = smov %s1015_s21  ;;  %20 = sbr.rel (!%p18_p5) target bundleno = 5 (0x5), region = 84 }
 0x1c8   :  { %725 = vsyncpa [#allocation3], 1 }
 0x1c9   :  { %727 = vsyncpa [#allocation3 + $0x1], 1 }
 0x1ca   :  { %728 = vsyncpa [#allocation5], 1 }
 0x1cb   :  { %730 = vsyncpa [#allocation5 + $0x1], 1 }

</bundles_post_ra>
